<compile_context>
chip_gen: v7x
topology: tpu7x:2x2x1
jax: 0.10.0
libtpu: 0.0.40
codegen_flags: <defaults>
</compile_context>

<pallas_src>
import jax
import jax.numpy as jnp
from jax.experimental import pallas as pl
from jax.experimental.pallas import tpu as pltpu

IN_DIM = 16 * 3   # 48  (== full last dim of x, no lane padding needed)
HID_DIM = 50
OUT_DIM = 10
HID_PAD = 128     # hidden feature dim lane-padded once (in the cached weights)
OUT_PAD = 16      # output width stored per row (vs 128): 8x less HBM writeback
TB_CAP = 2048     # max batch-tile rows; keeps VMEM use ~5 MiB on all generations


def _round_up(n, m):
    return ((n + m - 1) // m) * m


def _pad_to(a, shape):
    pads = [(0, s - d) for d, s in zip(a.shape, shape)]
    return jnp.pad(a, pads)


def resnet_mlp_kernel(x_ref, w1_ref, b1_ref, w2_ref, b2_ref, w3_ref, b3_ref, o_ref):
    """Fused forward for one batch tile: 3 MXU matmuls + VPU bias/relu/residual.

    x tile is (TB, 48); the first matmul contracts over K=48 directly (Mosaic pads
    the contraction internally).  Hidden width is 128 (zero-padded weights/biases,
    so padded lanes stay exactly 0 through bias+relu).  Output tile is (TB, 16).
    Elementwise math stays f32 regardless of matmul operand dtype; accumulation is
    f32 via preferred_element_type.
    """
    mdt = w1_ref.dtype  # matmul operand dtype (f32, or bf16 if prepare_params opted in)

    x = x_ref[...].astype(mdt)

    # l1 + relu
    h1 = jnp.dot(x, w1_ref[...], preferred_element_type=jnp.float32) + b1_ref[...]
    h1 = jnp.maximum(h1, 0.0)

    # l2 + relu
    h2 = jnp.dot(h1.astype(mdt), w2_ref[...], preferred_element_type=jnp.float32) + b2_ref[...]
    h2 = jnp.maximum(h2, 0.0)

    # residual add; dropout is identity in eval mode
    # TODO(synk): training-mode Dropout(0.1) would use pltpu.prng_seed + stateful_bernoulli.
    do = h2 + h1

    # l3 (N=16, masked stores -- cheaper than a 128-wide f32 writeback)
    out = jnp.dot(do.astype(mdt), w3_ref[...], preferred_element_type=jnp.float32) + b3_ref[...]
    o_ref[...] = out.astype(o_ref.dtype)


def prepare_params(params, mxu_dtype=None):
    """Pad + (optionally) cast the weights ONCE; cache and reuse the result.

    params: (w1[48,50], b1[1,50], w2[50,50], b2[1,50], w3[50,10], b3[1,10])
    mxu_dtype: e.g. jnp.bfloat16 to use the fast MXU path on v6e/v7x (weights and
               the in-kernel x cast use it; biases / accumulation stay f32).
    """
    w1, b1, w2, b2, w3, b3 = params
    wdt = mxu_dtype if mxu_dtype is not None else w1.dtype
    w1p = _pad_to(w1, (IN_DIM, HID_PAD)).astype(wdt)
    b1p = _pad_to(b1, (1, HID_PAD)).astype(jnp.float32)
    w2p = _pad_to(w2, (HID_PAD, HID_PAD)).astype(wdt)
    b2p = _pad_to(b2, (1, HID_PAD)).astype(jnp.float32)
    w3p = _pad_to(w3, (HID_PAD, OUT_PAD)).astype(wdt)
    b3p = _pad_to(b3, (1, OUT_PAD)).astype(jnp.float32)
    return (w1p, b1p, w2p, b2p, w3p, b3p)


def _choose_tb(batch, tb):
    """Pick the batch tile: big (amortize ~0.35us/step), capped at TB_CAP for VMEM,
    and small enough that the grid has >= 2 steps so v7x's 2 TensorCores both work."""
    cap = min(_round_up(max(tb, 8), 8), TB_CAP)
    return min(cap, max(8, _round_up(pl.cdiv(batch, 2), 8)))


def resnet_forward(x, prepared_params, *, tb=TB_CAP):
    """Fused, batch-tiled ResNet-MLP forward via pallas_call.

    x:               [B, 48] float32 (passed unpadded; cast to the MXU dtype in-kernel)
    prepared_params: output of prepare_params()
    tb:              max batch-tile rows (multiple of 8, capped at TB_CAP=2048).
    """
    w1p, b1p, w2p, b2p, w3p, b3p = prepared_params
    B, F = x.shape
    assert F == IN_DIM, (F, IN_DIM)

    TB = _choose_tb(B, tb)
    grid = (pl.cdiv(B, TB),)   # no padding of B: OOB output rows are dropped by Pallas

    # Advisory cost estimate (logical FLOPs / actual HBM bytes) for XLA's scheduler.
    flops = 2 * B * (IN_DIM * HID_DIM + HID_DIM * HID_DIM + HID_DIM * OUT_DIM)
    bytes_accessed = (
        int(x.size) * x.dtype.itemsize
        + sum(int(a.size) * a.dtype.itemsize for a in prepared_params)
        + B * OUT_PAD * 4
    )
    cost = pl.CostEstimate(flops=int(flops), transcendentals=0,
                           bytes_accessed=int(bytes_accessed))

    def resident(arr):  # full-array block, constant index_map -> stays VMEM-resident
        return pl.BlockSpec(arr.shape, lambda i: (0, 0))

    out = pl.pallas_call(
        resnet_mlp_kernel,
        out_shape=jax.ShapeDtypeStruct((B, OUT_PAD), jnp.float32),
        grid=grid,
        in_specs=[
            pl.BlockSpec((TB, IN_DIM), lambda i: (i, 0)),  # x tile, 48 == full last dim
            resident(w1p),                                  # (48, 128)
            resident(b1p),                                  # (1, 128)
            resident(w2p),                                  # (128, 128)
            resident(b2p),                                  # (1, 128)
            resident(w3p),                                  # (128, 16)
            resident(b3p),                                  # (1, 16)
        ],
        out_specs=pl.BlockSpec((TB, OUT_PAD), lambda i: (i, 0)),
        compiler_params=pltpu.CompilerParams(dimension_semantics=("parallel",)),
        cost_estimate=cost,
    )(x, w1p, b1p, w2p, b2p, w3p, b3p)

    # Logical output is 10-wide (cheap slice of a 16-wide slab).
    return out[:, :OUT_DIM]


def init_params(key, dtype=jnp.float32):
    """Deterministic parameter init mimicking nn.Linear's U(-1/sqrt(fan_in), ...)."""
    dims = [(IN_DIM, HID_DIM), (HID_DIM, HID_DIM), (HID_DIM, OUT_DIM)]
    params = []
    for i, (fan_in, fan_out) in enumerate(dims):
        kw, kb = jax.random.split(jax.random.fold_in(key, i))
        bound = 1.0 / jnp.sqrt(float(fan_in))
        w = jax.random.uniform(kw, (fan_in, fan_out), dtype, -bound, bound)
        b = jax.random.uniform(kb, (1, fan_out), dtype, -bound, bound)
        params.extend([w, b])
    return tuple(params)


def reference_forward(x, params):
    """Plain-JAX reference for correctness checking."""
    w1, b1, w2, b2, w3, b3 = params
    h1 = jnp.maximum(x @ w1 + b1, 0.0)
    h2 = jnp.maximum(h1 @ w2 + b2, 0.0)
    do = h2 + h1  # dropout identity (eval)
    return do @ w3 + b3


if __name__ == "__main__":
    key = jax.random.PRNGKey(0)
    kx, kp = jax.random.split(key)
    params = init_params(kp)

    # Pad/cast weights once and reuse (review: don't re-pad on every forward).
    params_f32 = prepare_params(params)                                # exact path
    params_bf16 = prepare_params(params, mxu_dtype=jnp.bfloat16)       # fast MXU path

    # Small shape consistent with the module: batch=8, features=16*3=48.
    B = 8
    x = jax.random.normal(kx, (B, IN_DIM), dtype=jnp.float32)

    out = jax.block_until_ready(resnet_forward(x, params_f32))
    ref = reference_forward(x, params)
    assert out.shape == (B, OUT_DIM), out.shape
    assert jnp.allclose(out, ref, atol=1e-5, rtol=1e-5), "mismatch vs reference (B=8, f32)"

    # Exercise the multi-tile grid path (grid > 1, ragged last tile) as well.
    B2 = 40
    x2 = jax.random.normal(jax.random.fold_in(kx, 1), (B2, IN_DIM), dtype=jnp.float32)
    out2 = jax.block_until_ready(resnet_forward(x2, params_f32, tb=16))
    ref2 = reference_forward(x2, params)
    assert out2.shape == (B2, OUT_DIM), out2.shape
    assert jnp.allclose(out2, ref2, atol=1e-5, rtol=1e-5), "mismatch vs reference (tiled, f32)"

    # bf16 MXU-operand path (recommended default on v6e/v7x): looser tolerance.
    out3 = jax.block_until_ready(resnet_forward(x2, params_bf16, tb=16))
    assert out3.shape == (B2, OUT_DIM), out3.shape
    assert jnp.allclose(out3, ref2, atol=5e-2, rtol=5e-2), "mismatch vs reference (bf16)"

    print("KERNEL_OK")
</pallas_src>

<mosaic_0001>
module attributes {stable_mosaic.version = 11 : i64} {
  func.func @resnet_mlp_kernel(%arg0: i32, %arg1: memref<8x48xf32, #tpu.memory_space<vmem>>, %arg2: memref<48x128xf32, #tpu.memory_space<vmem>>, %arg3: memref<1x128xf32, #tpu.memory_space<vmem>>, %arg4: memref<128x128xf32, #tpu.memory_space<vmem>>, %arg5: memref<1x128xf32, #tpu.memory_space<vmem>>, %arg6: memref<128x16xf32, #tpu.memory_space<vmem>>, %arg7: memref<1x16xf32, #tpu.memory_space<vmem>>, %arg8: memref<8x16xf32, #tpu.memory_space<vmem>>) attributes {dimension_semantics = [#tpu.dimension_semantics<parallel>], iteration_bounds = array<i64: 1>, scalar_prefetch = 0 : i64, scratch_operands = 0 : i64, tpu.core_type = #tpu.core_type<tc>, window_params = [{transform_indices = @transform_0, window_bounds = array<i64: 8, 48>}, {pipeline_mode = #tpu.pipeline_mode<synchronous>, transform_indices = @transform_1, window_bounds = array<i64: 48, 128>}, {pipeline_mode = #tpu.pipeline_mode<synchronous>, transform_indices = @transform_2, window_bounds = array<i64: 1, 128>}, {pipeline_mode = #tpu.pipeline_mode<synchronous>, transform_indices = @transform_3, window_bounds = array<i64: 128, 128>}, {pipeline_mode = #tpu.pipeline_mode<synchronous>, transform_indices = @transform_4, window_bounds = array<i64: 1, 128>}, {pipeline_mode = #tpu.pipeline_mode<synchronous>, transform_indices = @transform_5, window_bounds = array<i64: 128, 16>}, {pipeline_mode = #tpu.pipeline_mode<synchronous>, transform_indices = @transform_6, window_bounds = array<i64: 1, 16>}, {transform_indices = @transform_7, window_bounds = array<i64: 8, 16>}]} {
    %c0 = arith.constant 0 : index
    %c0_0 = arith.constant 0 : index
    %0 = vector.load %arg1[%c0, %c0_0] : memref<8x48xf32, #tpu.memory_space<vmem>>, vector<8x48xf32>
    %c0_1 = arith.constant 0 : index
    %c0_2 = arith.constant 0 : index
    %1 = vector.load %arg2[%c0_1, %c0_2] : memref<48x128xf32, #tpu.memory_space<vmem>>, vector<48x128xf32>
    %cst = arith.constant dense<0.000000e+00> : vector<8x128xf32>
    %2 = tpu.matmul %0, %1, %cst {dimension_numbers = #tpu.dot_dimension_numbers<[1], [0], [0], [1], [0, 0, 1, 1], [], []>} : vector<8x48xf32>, vector<48x128xf32>, vector<8x128xf32> -> vector<8x128xf32>
    %c0_3 = arith.constant 0 : index
    %c0_4 = arith.constant 0 : index
    %3 = vector.load %arg3[%c0_3, %c0_4] : memref<1x128xf32, #tpu.memory_space<vmem>>, vector<1x128xf32>
    %4 = vector.broadcast %3 : vector<1x128xf32> to vector<8x128xf32>
    %5 = arith.addf %2, %4 : vector<8x128xf32>
    %cst_5 = arith.constant 0.000000e+00 : f32
    %6 = vector.broadcast %cst_5 : f32 to vector<8x128xf32>
    %7 = arith.maximumf %5, %6 : vector<8x128xf32>
    %c0_6 = arith.constant 0 : index
    %c0_7 = arith.constant 0 : index
    %8 = vector.load %arg4[%c0_6, %c0_7] : memref<128x128xf32, #tpu.memory_space<vmem>>, vector<128x128xf32>
    %cst_8 = arith.constant dense<0.000000e+00> : vector<8x128xf32>
    %9 = tpu.matmul %7, %8, %cst_8 {dimension_numbers = #tpu.dot_dimension_numbers<[1], [0], [0], [1], [0, 0, 1, 1], [], []>} : vector<8x128xf32>, vector<128x128xf32>, vector<8x128xf32> -> vector<8x128xf32>
    %c0_9 = arith.constant 0 : index
    %c0_10 = arith.constant 0 : index
    %10 = vector.load %arg5[%c0_9, %c0_10] : memref<1x128xf32, #tpu.memory_space<vmem>>, vector<1x128xf32>
    %11 = vector.broadcast %10 : vector<1x128xf32> to vector<8x128xf32>
    %12 = arith.addf %9, %11 : vector<8x128xf32>
    %cst_11 = arith.constant 0.000000e+00 : f32
    %13 = vector.broadcast %cst_11 : f32 to vector<8x128xf32>
    %14 = arith.maximumf %12, %13 : vector<8x128xf32>
    %15 = arith.addf %14, %7 : vector<8x128xf32>
    %c0_12 = arith.constant 0 : index
    %c0_13 = arith.constant 0 : index
    %16 = vector.load %arg6[%c0_12, %c0_13] : memref<128x16xf32, #tpu.memory_space<vmem>>, vector<128x16xf32>
    %cst_14 = arith.constant dense<0.000000e+00> : vector<8x16xf32>
    %17 = tpu.matmul %15, %16, %cst_14 {dimension_numbers = #tpu.dot_dimension_numbers<[1], [0], [0], [1], [0, 0, 1, 1], [], []>} : vector<8x128xf32>, vector<128x16xf32>, vector<8x16xf32> -> vector<8x16xf32>
    %c0_15 = arith.constant 0 : index
    %c0_16 = arith.constant 0 : index
    %18 = vector.load %arg7[%c0_15, %c0_16] : memref<1x16xf32, #tpu.memory_space<vmem>>, vector<1x16xf32>
    %19 = vector.broadcast %18 : vector<1x16xf32> to vector<8x16xf32>
    %20 = arith.addf %17, %19 : vector<8x16xf32>
    %c0_17 = arith.constant 0 : index
    %c0_18 = arith.constant 0 : index
    %21 = vector.load %arg8[%c0_17, %c0_18] : memref<8x16xf32, #tpu.memory_space<vmem>>, vector<8x16xf32>
    tpu.vector_store %arg8[%c0_17, %c0_18], %20 {strides = array<i32>} : memref<8x16xf32, #tpu.memory_space<vmem>>, vector<8x16xf32>,
    return
  }
  func.func @transform_0(%arg0: i32) -> (i32, i32) {
    %c0_i32 = arith.constant 0 : i32
    %c0_i32_0 = arith.constant 0 : i32
    return %arg0, %c0_i32 : i32, i32
  }
  func.func @transform_1(%arg0: i32) -> (i32, i32) {
    %c0_i32 = arith.constant 0 : i32
    %c0_i32_0 = arith.constant 0 : i32
    %c0_i32_1 = arith.constant 0 : i32
    return %c0_i32, %c0_i32_0 : i32, i32
  }
  func.func @transform_2(%arg0: i32) -> (i32, i32) {
    %c0_i32 = arith.constant 0 : i32
    %c0_i32_0 = arith.constant 0 : i32
    %c0_i32_1 = arith.constant 0 : i32
    return %c0_i32, %c0_i32_0 : i32, i32
  }
  func.func @transform_3(%arg0: i32) -> (i32, i32) {
    %c0_i32 = arith.constant 0 : i32
    %c0_i32_0 = arith.constant 0 : i32
    %c0_i32_1 = arith.constant 0 : i32
    return %c0_i32, %c0_i32_0 : i32, i32
  }
  func.func @transform_4(%arg0: i32) -> (i32, i32) {
    %c0_i32 = arith.constant 0 : i32
    %c0_i32_0 = arith.constant 0 : i32
    %c0_i32_1 = arith.constant 0 : i32
    return %c0_i32, %c0_i32_0 : i32, i32
  }
  func.func @transform_5(%arg0: i32) -> (i32, i32) {
    %c0_i32 = arith.constant 0 : i32
    %c0_i32_0 = arith.constant 0 : i32
    %c0_i32_1 = arith.constant 0 : i32
    return %c0_i32, %c0_i32_0 : i32, i32
  }
  func.func @transform_6(%arg0: i32) -> (i32, i32) {
    %c0_i32 = arith.constant 0 : i32
    %c0_i32_0 = arith.constant 0 : i32
    %c0_i32_1 = arith.constant 0 : i32
    return %c0_i32, %c0_i32_0 : i32, i32
  }
  func.func @transform_7(%arg0: i32) -> (i32, i32) {
    %c0_i32 = arith.constant 0 : i32
    %c0_i32_0 = arith.constant 0 : i32
    return %arg0, %c0_i32 : i32, i32
  }
}

</mosaic_0001>

<bundles_post_ra>
// kernel: tpu_custom_call.1
= control target key start
LH: loop header
LB: loop body
LE: loop exit
PB: predicated region body
PF: predicated region fallthrough
CT: control target
= control target key end

     0   :  { %12 = vsyncpa [#allocation3], 0  ;;  %s778_s0 = inlined_call_operand.vmem [shape: f32[8,48], index: 0, kind: input, shape index: {}]   ;;  %s779_s1 = inlined_call_operand.hbm [shape: f32[48,128], index: 1, kind: input, shape index: {}]   ;;  %s780_s2 = inlined_call_operand.vmem [shape: f32[1,128], index: 2, kind: input, shape index: {}]   ;;  %s781_s3 = inlined_call_operand.vmem [shape: f32[128,128], index: 3, kind: input, shape index: {}]   ;;  %s782_s4 = inlined_call_operand.vmem [shape: f32[1,128], index: 4, kind: input, shape index: {}]   ;;  %s783_s5 = inlined_call_operand.vmem [shape: f32[128,16], index: 5, kind: input, shape index: {}]   ;;  %s784_s6 = inlined_call_operand.vmem [shape: f32[1,16], index: 6, kind: input, shape index: {}]   ;;  %s785_s7 = inlined_call_operand.hbm [shape: f32[8,16], index: 7, kind: output, shape index: {}]  }
   0x1   :  { %13 = vsyncpa [#allocation4], 0  ;;  %s577_s24 = smov [#allocation2]   ;;  %s529_s28 = scalar_lea.hbm %s779_s1, 768 }
   0x2   :  { %s21_s25 = sshll.u32 %s577_s24, 4  ;;  %p530_p0 = scmp.ne.s32.totalorder %s779_s1, %s529_s28  ;;  %s22_s25 = int_to_ptr.vmem [resolvable:$true] %s21_s25 }
   0x3   :  { %p533_p1 = scmp.lt.u32.totalorder %s529_s28, %s779_s1 }
   0x5   :  { %p535_p2 = pnand %p533_p1, %p530_p0 }
   0x7   :  { %538 = shalt.err (!%p535_p2)
}
   0x8   :  { %s539_s10 = scalar_lea.vmem %s22_s25, 768  ;;  %p544_p4 = scmp.lt.s32.totalorder %s22_s25, %s22_s25 }
   0x9   :  { %p540_p3 = scmp.ne.s32.totalorder %s22_s25, %s539_s10  ;;  %p545_p5 = scmp.lt.s32.totalorder %s539_s10, %s539_s10 }
   0xb   :  { %p546_p6 = por %p545_p5, %p544_p4 }
   0xd   :  { %p547_p7 = pnand %p546_p6, %p540_p3 }
   0xf   :  { %550 = shalt.err (!%p547_p7)
}
  0x10   :  { %s578_s11 = smov 128   ;;  %s579_s12 = smov 8  }
  0x11   :  { %27 = dma.hbm_to_vmem [thread:$0]  %s779_s1, 768, %s22_s25, [#allocation3], %s578_s11, %s578_s11, %s579_s12  }
  0x12   :  { %573 = dma.done.wait [#allocation3], 768  }
  0x13   :  { %574 = vsyncadd [#allocation3], 4294966528  ;;  %v580_v0 = vmov 0.0|0.0   ;;  %vm581_vm0 = vmmov 0   ;;  %v582_v1 = vmov 0.0   ;;  %v42_v2 = vld [vmem:[#allocation2] sm:$0xff] }
  0x14   :  { %465 = vmatprep.subr.bf16.mxu0 %v580_v0  ;;  %392 = vmatprep.mubr.msk.f32.mxu0 %vm581_vm0, %v582_v1  ;;  %v43_v3 = vld [vmem:[#allocation2 + $0x8] sm:$0xff]  ;;  %v44_v4 = vld [vmem:[#allocation2 + $0x10] sm:$0xff]  ;;  %v45_v6 = vld [vmem:[#allocation2 + $0x18] sm:$0xff]  ;;  %vm55_vm1 = vcmask 392192   ;;  %s583_s10 = smov [#allocation5]   ;;  %vm318_vm2 = vcmask 130048  }
  0x15   :  { %474 = vmatprep.subr.bf16.mxu1 %v580_v0  ;;  %427 = vmatprep.mubr.msk.f32.mxu1 %vm581_vm0, %v582_v1  ;;  %v466_v5 = vpack.c.bf16 %v43_v3, %v42_v2  ;;  %v130_v7 = vld [vmem:[%s781_s3] sm:$0xff]  ;;  %v131_v8 = vld [vmem:[%s781_s3 + $0x8] sm:$0xff]  ;;  %v469_v9 = vpack.c.bf16 %v45_v6, %v44_v4  ;;  %v132_v11 = vld [vmem:[%s781_s3 + $0x10] sm:$0xff]  ;;  %s326_s11 = sshll.u32 %s583_s10, 4  ;;  %s327_s11 = int_to_ptr.vmem [resolvable:$true] %s326_s11 }
  0x16   :  { %v475_v10 = vpack.c.bf16 %v131_v8, %v130_v7  ;;  %v133_v12 = vld [vmem:[%s781_s3 + $0x18] sm:$0xff]  ;;  %v46_v13 = vld [vmem:[#allocation2 + $0x20] sm:$0xff]  ;;  %v47_v14 = vld [vmem:[#allocation2 + $0x28] sm:$0xff]  ;;  %p556_p9 = scmp.lt.s32.totalorder %s327_s11, %s327_s11 }
  0x17   :  { %467 = vmatpush3.bf16.msra.mxu0 %v466_v5  ;;  %v478_v15 = vpack.c.bf16 %v133_v12, %v132_v11  ;;  %v134_v16 = vld [vmem:[%s781_s3 + $0x20] sm:$0xff]  ;;  %v135_v17 = vld [vmem:[%s781_s3 + $0x28] sm:$0xff]  ;;  %v472_v18 = vpack.c.bf16 %v47_v14, %v46_v13  ;;  %v136_v20 = vld [vmem:[%s781_s3 + $0x30] sm:$0xff] }
  0x18   :  { %468 = vmatprep.subr.bf16.mxu0 %v580_v0  ;;  %476 = vmatpush3.bf16.msra.mxu1 %v475_v10  ;;  %v481_v19 = vpack.c.bf16 %v135_v17, %v134_v16  ;;  %v137_v21 = vld [vmem:[%s781_s3 + $0x38] sm:$0xff]  ;;  %v41_v22 = vld [vmem:[%s778_s0] sm:$0xff]  ;;  %v139_v25 = vld [vmem:[%s781_s3 + $0x48] sm:$0xff] }
  0x19   :  { %477 = vmatprep.subr.bf16.mxu1 %v580_v0  ;;  %v484_v23 = vpack.c.bf16 %v137_v21, %v136_v20  ;;  %v138_v24 = vld [vmem:[%s781_s3 + $0x40] sm:$0xff]  ;;  %v140_v27 = vld [vmem:[%s781_s3 + $0x50] sm:$0xff]  ;;  %v141_v28 = vld [vmem:[%s781_s3 + $0x58] sm:$0xff] }
  0x1a   :  { %v487_v26 = vpack.c.bf16 %v139_v25, %v138_v24  ;;  %v490_v29 = vpack.c.bf16 %v141_v28, %v140_v27  ;;  %v142_v30 = vld [vmem:[%s781_s3 + $0x60] sm:$0xff]  ;;  %v143_v31 = vld [vmem:[%s781_s3 + $0x68] sm:$0xff]  ;;  %v144_v33 = vld [vmem:[%s781_s3 + $0x70] sm:$0xff] }
  0x1b   :  { %470 = vmatpush3.bf16.msra.mxu0 %v469_v9  ;;  %v493_v32 = vpack.c.bf16 %v143_v31, %v142_v30  ;;  %v145_v34 = vld [vmem:[%s781_s3 + $0x78] sm:$0xff]  ;;  %v225_v36 = vld [vmem:[%s783_s5] sm:$0xff]  ;;  %v226_v37 = vld [vmem:[%s783_s5 + $0x8] sm:$0xff] }
  0x1c   :  { %471 = vmatprep.subr.bf16.mxu0 %v580_v0  ;;  %479 = vmatpush3.bf16.msra.mxu1 %v478_v15  ;;  %v496_v35 = vpack.c.bf16 %v145_v34, %v144_v33  ;;  %v227_v38 = vld [vmem:[%s783_s5 + $0x10] sm:$0xff]  ;;  %v499_v39 = vpack.c.bf16 %v226_v37, %v225_v36  ;;  %v228_v40 = vld [vmem:[%s783_s5 + $0x18] sm:$0xff]  ;;  %v229_v42 = vld [vmem:[%s783_s5 + $0x20] sm:$0xff] }
  0x1d   :  { %480 = vmatprep.subr.bf16.mxu1 %v580_v0  ;;  %v502_v41 = vpack.c.bf16 %v228_v40, %v227_v38  ;;  %v230_v43 = vld [vmem:[%s783_s5 + $0x28] sm:$0xff]  ;;  %v231_v45 = vld [vmem:[%s783_s5 + $0x30] sm:$0xff]  ;;  %v232_v46 = vld [vmem:[%s783_s5 + $0x38] sm:$0xff] }
  0x1e   :  { %v505_v44 = vpack.c.bf16 %v230_v43, %v229_v42  ;;  %v508_v47 = vpack.c.bf16 %v232_v46, %v231_v45  ;;  %v233_v48 = vld [vmem:[%s783_s5 + $0x40] sm:$0xff]  ;;  %v234_v49 = vld [vmem:[%s783_s5 + $0x48] sm:$0xff]  ;;  %v235_v51 = vld [vmem:[%s783_s5 + $0x50] sm:$0xff] }
  0x1f   :  { %473 = vmatpush3.bf16.msra.mxu0 %v472_v18  ;;  %v511_v50 = vpack.c.bf16 %v234_v49, %v233_v48  ;;  %v236_v52 = vld [vmem:[%s783_s5 + $0x58] sm:$0xff]  ;;  %v335_v54 = vld [vmem:[%s780_s2] ss:$0 sm:$0xff]  ;;  %v238_v60 = vld [vmem:[%s783_s5 + $0x68] sm:$0xff] }
  0x20   :  { %498 = vmatprep.subr.bf16.mxu0 %v580_v0  ;;  %482 = vmatpush3.bf16.msra.mxu1 %v481_v19  ;;  %v514_v53 = vpack.c.bf16 %v236_v52, %v235_v51  ;;  %v237_v59 = vld [vmem:[%s783_s5 + $0x60] sm:$0xff]  ;;  %v239_v62 = vld [vmem:[%s783_s5 + $0x70] sm:$0xff]  ;;  %v240_v63 = vld [vmem:[%s783_s5 + $0x78] sm:$0xff]  ;;  %s551_s5 = scalar_lea.vmem %s327_s11, 128 }
  0x21   :  { %483 = vmatprep.subr.bf16.mxu1 %v580_v0  ;;  %v517_v61 = vpack.c.bf16 %v238_v60, %v237_v59  ;;  %v337_v2 = vld [vmem:[%s782_s4] ss:$0 sm:$0xff]  ;;  %p552_p8 = scmp.ne.s32.totalorder %s327_s11, %s551_s5  ;;  %p557_p10 = scmp.lt.s32.totalorder %s551_s5, %s551_s5 }
  0x22   :  { %393 = vmatmul.mubr.msk.f32.vlgmr.msra.gmra.mrb[0].mxu0 %vm55_vm1, %v41_v22 }
  0x23   :  { %462 = vmatprep.mubr.msk.f32.mxu0 %vm581_vm0, %v582_v1  ;;  %500 = vmatpush3.bf16.msra.mxu0 %v499_v39  ;;  %v520_v1 = vpack.c.bf16 %v240_v63, %v239_v62  ;;  %p558_p11 = por %p557_p10, %p556_p9 }
  0x24   :  { %485 = vmatpush3.bf16.msra.mxu1 %v484_v23  ;;  %501 = vmatprep.subr.bf16.mxu0 %v580_v0 }
  0x25   :  { %486 = vmatprep.subr.bf16.mxu1 %v580_v0  ;;  %p559_p12 = pnand %p558_p11, %p552_p8 }
  0x27   :  { %503 = vmatpush3.bf16.msra.mxu0 %v502_v41 }
  0x28   :  { %488 = vmatpush3.bf16.msra.mxu1 %v487_v26  ;;  %504 = vmatprep.subr.bf16.mxu0 %v580_v0 }
  0x29   :  { %489 = vmatprep.subr.bf16.mxu1 %v580_v0 }
  0x2b   :  { %506 = vmatpush3.bf16.msra.mxu0 %v505_v44 }
  0x2c   :  { %491 = vmatpush3.bf16.msra.mxu1 %v490_v29  ;;  %507 = vmatprep.subr.bf16.mxu0 %v580_v0 }
  0x2d   :  { %492 = vmatprep.subr.bf16.mxu1 %v580_v0 }
  0x2f   :  { %509 = vmatpush3.bf16.msra.mxu0 %v508_v47 }
  0x30   :  { %494 = vmatpush3.bf16.msra.mxu1 %v493_v32  ;;  %510 = vmatprep.subr.bf16.mxu0 %v580_v0 }
  0x31   :  { %495 = vmatprep.subr.bf16.mxu1 %v580_v0 }
  0x33   :  { %512 = vmatpush3.bf16.msra.mxu0 %v511_v50 }
  0x34   :  { %497 = vmatpush3.bf16.msra.mxu1 %v496_v35  ;;  %513 = vmatprep.subr.bf16.mxu0 %v580_v0 }
  0x37   :  { %515 = vmatpush3.bf16.msra.mxu0 %v514_v53 }
  0x38   :  { %516 = vmatprep.subr.bf16.mxu0 %v580_v0 }
  0x3b   :  { %518 = vmatpush3.bf16.msra.mxu0 %v517_v61 }
  0x3c   :  { %519 = vmatprep.subr.bf16.mxu0 %v580_v0  ;;  %v338_v0 = vld [vmem:[%s784_s6] ss:$0 sm:$0xff] }
  0x3f   :  { %521 = vmatpush3.bf16.msra.mxu0 %v520_v1 }
  0xf5   :  { %v125_v55 = vpop.f32.mrb[0].mxu0 }
  0xf6   :  { %v126_v56 = vadd.f32 %v335_v54, %v125_v55  ;;  %v394_v57 = vpop.f32.mrb[1].mxu0 }
  0xf8   :  { %v129_v58 = vmax.f32 %v126_v56, 0.0 }
  0xfa   :  { %428 = vmatmul.mubr.f32.vlgmr.msra.gmra.mrb[0].mxu1 %v129_v58 }
 0x1cd   :  { %v219_v3 = vpop.f32.mrb[0].mxu1 }
 0x1ce   :  { %v220_v4 = vadd.f32 %v337_v2, %v219_v3  ;;  %v429_v5 = vpop.f32.mrb[1].mxu1 }
 0x1d0   :  { %v223_v6 = vmax.f32 %v220_v4, 0.0 }
 0x1d2   :  { %v224_v7 = vadd.f32 %v223_v6, %v129_v58 }
 0x1d4   :  { %463 = vmatmul.mubr.f32.vlgmr.msra.gmra.mrb[2].mxu0 %v224_v7 }
 0x2a7   :  { %v314_v8 = vpop.f32.mrb[2].mxu0 }
 0x2a8   :  { %v315_v9 = vadd.f32 %v338_v0, %v314_v8  ;;  %v464_v10 = vpop.f32.mrb[3].mxu0 }
 0x2aa   :  { %319 = vst.msk [vmem:[#allocation5] sm:$0xff] %vm318_vm2, %v315_v9 }
 0x2ab   :  { %562 = shalt.err (!%p559_p12)
}
 0x2ac   :  { %s563_s0 = scalar_lea.hbm %s785_s7, 128 }
 0x2ad   :  { %p564_p13 = scmp.ne.s32.totalorder %s785_s7, %s563_s0  ;;  %p567_p0 = scmp.lt.u32.totalorder %s563_s0, %s785_s7 }
 0x2af   :  { %p569_p1 = pnand %p567_p0, %p564_p13 }
 0x2b1   :  { %572 = shalt.err (!%p569_p1)
}
 0x2b2   :  { %329 = dma.vmem_to_hbm [thread:$0]  %s327_s11, 128, %s785_s7, [#allocation4]  }
 0x2b3   :  { %575 = dma.done.wait [#allocation4], 128  }
 0x2b4   :  { %576 = vsyncadd [#allocation4], 4294967168 }
 0x2b5   :  { %333 = vsyncpa [#allocation3], 1 }
 0x2b6   :  { %334 = vsyncpa [#allocation4], 1 }

</bundles_post_ra>
